<compile_context>
chip_gen: v6e
topology: v6e:2x2x1
jax: 0.10.0
libtpu: 0.0.40
codegen_flags: <defaults>
</compile_context>

<pallas_src>
import functools

import jax
import jax.numpy as jnp
from jax.experimental import pallas as pl
from jax.experimental.pallas import tpu as pltpu


def _decomposition_kernel(x_ref, seas_ref, trend_ref, xpad_ref, *,
                          kernel_size, front_count, end_count):
    # x_ref:               (Bt, L, D)     the ONLY HBM input stream
    # seas_ref, trend_ref: (Bt, L, D)     outputs
    # xpad_ref:            (Bt, L_pad, D) f32 VMEM scratch (edge-padded block)
    Bt, L, D = x_ref.shape
    xf = x_ref[...].astype(jnp.float32)

    # Build the edge-replicated padded sequence entirely in VMEM (no HBM copy).
    xpad_ref[:, front_count:front_count + L, :] = xf
    if front_count > 0:
        xpad_ref[:, 0:front_count, :] = jnp.broadcast_to(
            xf[:, 0:1, :], (Bt, front_count, D))
    if end_count > 0:
        xpad_ref[:, front_count + L:front_count + L + end_count, :] = (
            jnp.broadcast_to(xf[:, L - 1:L, :], (Bt, end_count, D)))

    # Moving average over L: sum of kernel_size shifted windows, pairwise tree
    # reduction (log-depth dependency chain), f32 accumulation.
    terms = [xpad_ref[:, j:j + L, :] for j in range(kernel_size)]
    while len(terms) > 1:
        nxt = [terms[i] + terms[i + 1] for i in range(0, len(terms) - 1, 2)]
        if len(terms) % 2:
            nxt.append(terms[-1])
        terms = nxt
    trend = terms[0] * (1.0 / kernel_size)

    trend_ref[...] = trend.astype(trend_ref.dtype)
    seas_ref[...] = (xf - trend).astype(seas_ref.dtype)


def _choose_batch_block(batch, seq_len, n_feat, itemsize):
    """Largest batch block that (a) keeps per-step VMEM modest on all TPU gens
    (incl. v7x's 64 MiB VMEM / 32 MiB scoped default) and (b) leaves >= 2 grid
    steps so both v7x TensorCores get work."""
    # Rough per-batch-row bytes: double-buffered in/out blocks + f32 scratch/temps.
    bytes_per_row = seq_len * n_feat * (6 * itemsize + 8 * 4)
    budget = 12 * 1024 * 1024
    divisors = [b for b in range(1, batch + 1) if batch % b == 0]
    fitting = [b for b in divisors if b * bytes_per_row <= budget] or [1]
    preferred = [b for b in fitting if (batch // b) >= 2] or fitting
    return max(preferred)


def decomposition_layer(x, kernel_size, n_features):
    """Pallas equivalent of DecompositionLayer.forward.

    x: (B, L, D) float array. Returns (x_seasonal, x_trend), both (B, L, D).
    """
    B, L, D = x.shape
    num_of_pads = (kernel_size - 1) // 2
    front_count = num_of_pads + 1 if kernel_size > n_features else num_of_pads
    end_count = num_of_pads
    L_pad = front_count + L + end_count

    # The reference computes x - trend, which requires AvgPool output length == L.
    if L_pad - kernel_size + 1 != L:
        raise ValueError(
            f"AvgPool1d output length {L_pad - kernel_size + 1} != seq_len {L}; "
            "the reference module would fail on this (kernel_size, n_features) "
            "configuration.")

    Bt = _choose_batch_block(B, L, D, x.dtype.itemsize)
    grid = (B // Bt,)

    kernel = functools.partial(
        _decomposition_kernel,
        kernel_size=kernel_size,
        front_count=front_count,
        end_count=end_count)

    out_shape = (
        jax.ShapeDtypeStruct((B, L, D), x.dtype),  # x_seasonal
        jax.ShapeDtypeStruct((B, L, D), x.dtype),  # x_trend
    )

    grid_spec = pltpu.PrefetchScalarGridSpec(
        num_scalar_prefetch=0,
        grid=grid,
        in_specs=[pl.BlockSpec((Bt, L, D), lambda b: (b, 0, 0))],
        out_specs=[
            pl.BlockSpec((Bt, L, D), lambda b: (b, 0, 0)),
            pl.BlockSpec((Bt, L, D), lambda b: (b, 0, 0)),
        ],
        scratch_shapes=[pltpu.VMEM((Bt, L_pad, D), jnp.float32)],
    )

    x_seasonal, x_trend = pl.pallas_call(
        kernel,
        out_shape=out_shape,
        grid_spec=grid_spec,
        compiler_params=pltpu.CompilerParams(
            dimension_semantics=("parallel",)),
    )(x)
    return x_seasonal, x_trend


def _reference_jax(x, kernel_size, n_features):
    """Pure-JAX reference mirroring the PyTorch forward exactly."""
    num_of_pads = (kernel_size - 1) // 2
    front_count = num_of_pads + 1 if kernel_size > n_features else num_of_pads
    front = jnp.repeat(x[:, 0:1, :], front_count, axis=1)
    end = jnp.repeat(x[:, -1:, :], num_of_pads, axis=1)
    x_padded = jnp.concatenate([front, x, end], axis=1)
    L = x.shape[1]
    windows = jnp.stack(
        [x_padded[:, j:j + L, :] for j in range(kernel_size)], axis=0)
    x_trend = jnp.mean(windows, axis=0)
    return x - x_trend, x_trend


if __name__ == "__main__":
    # DecompositionLayer has no learned parameters; only hyperparameters.
    kernel_size = 5
    B, L, D = 2, 16, 32
    n_features = D  # kernel_size <= n_features branch (symmetric padding)

    key = jax.random.PRNGKey(0)
    x = jax.random.normal(key, (B, L, D), dtype=jnp.float32)

    seasonal, trend = decomposition_layer(x, kernel_size, n_features)
    jax.block_until_ready((seasonal, trend))

    ref_seasonal, ref_trend = _reference_jax(x, kernel_size, n_features)
    assert jnp.allclose(trend, ref_trend, atol=1e-5, rtol=1e-5)
    assert jnp.allclose(seasonal, ref_seasonal, atol=1e-5, rtol=1e-5)

    print("KERNEL_OK")
</pallas_src>

<mosaic_0001>
module attributes {stable_mosaic.version = 11 : i64} {
  func.func @_decomposition_kernel(%arg0: i32, %arg1: memref<1x16x32xf32, #tpu.memory_space<vmem>>, %arg2: memref<1x16x32xf32, #tpu.memory_space<vmem>>, %arg3: memref<1x16x32xf32, #tpu.memory_space<vmem>>, %arg4: memref<1x20x32xf32, #tpu.memory_space<vmem>>) attributes {dimension_semantics = [#tpu.dimension_semantics<parallel>], iteration_bounds = array<i64: 2>, scalar_prefetch = 0 : i64, scratch_operands = 1 : i64, tpu.core_type = #tpu.core_type<tc>, window_params = [{transform_indices = @transform_0, window_bounds = array<i64: 1, 16, 32>}, {transform_indices = @transform_1, window_bounds = array<i64: 1, 16, 32>}, {transform_indices = @transform_2, window_bounds = array<i64: 1, 16, 32>}]} {
    %c0 = arith.constant 0 : index
    %c0_0 = arith.constant 0 : index
    %c0_1 = arith.constant 0 : index
    %0 = vector.load %arg1[%c0, %c0_0, %c0_1] : memref<1x16x32xf32, #tpu.memory_space<vmem>>, vector<1x16x32xf32>
    %c0_2 = arith.constant 0 : index
    %c2 = arith.constant 2 : index
    %c0_3 = arith.constant 0 : index
    %1 = vector.load %arg4[%c0_2, %c2, %c0_3] : memref<1x20x32xf32, #tpu.memory_space<vmem>>, vector<1x16x32xf32>
    tpu.vector_store %arg4[%c0_2, %c2, %c0_3], %0 {strides = array<i32>} : memref<1x20x32xf32, #tpu.memory_space<vmem>>, vector<1x16x32xf32>,
    %2 = vector.extract_strided_slice %0 {offsets = [0, 0, 0], sizes = [1, 1, 32], strides = [1, 1, 1]} : vector<1x16x32xf32> to vector<1x1x32xf32>
    %3 = vector.shape_cast %2 : vector<1x1x32xf32> to vector<1x1x32xf32>
    %4 = vector.broadcast %3 : vector<1x1x32xf32> to vector<1x2x32xf32>
    %c0_4 = arith.constant 0 : index
    %c0_5 = arith.constant 0 : index
    %c0_6 = arith.constant 0 : index
    %5 = vector.load %arg4[%c0_4, %c0_5, %c0_6] : memref<1x20x32xf32, #tpu.memory_space<vmem>>, vector<1x2x32xf32>
    tpu.vector_store %arg4[%c0_4, %c0_5, %c0_6], %4 {strides = array<i32>} : memref<1x20x32xf32, #tpu.memory_space<vmem>>, vector<1x2x32xf32>,
    %6 = vector.extract_strided_slice %0 {offsets = [0, 15, 0], sizes = [1, 1, 32], strides = [1, 1, 1]} : vector<1x16x32xf32> to vector<1x1x32xf32>
    %7 = vector.shape_cast %6 : vector<1x1x32xf32> to vector<1x1x32xf32>
    %8 = vector.broadcast %7 : vector<1x1x32xf32> to vector<1x2x32xf32>
    %c0_7 = arith.constant 0 : index
    %c18 = arith.constant 18 : index
    %c0_8 = arith.constant 0 : index
    %9 = vector.load %arg4[%c0_7, %c18, %c0_8] : memref<1x20x32xf32, #tpu.memory_space<vmem>>, vector<1x2x32xf32>
    tpu.vector_store %arg4[%c0_7, %c18, %c0_8], %8 {strides = array<i32>} : memref<1x20x32xf32, #tpu.memory_space<vmem>>, vector<1x2x32xf32>,
    %c0_9 = arith.constant 0 : index
    %c0_10 = arith.constant 0 : index
    %c0_11 = arith.constant 0 : index
    %10 = vector.load %arg4[%c0_9, %c0_10, %c0_11] : memref<1x20x32xf32, #tpu.memory_space<vmem>>, vector<1x16x32xf32>
    %c0_12 = arith.constant 0 : index
    %c1 = arith.constant 1 : index
    %c0_13 = arith.constant 0 : index
    %11 = vector.load %arg4[%c0_12, %c1, %c0_13] : memref<1x20x32xf32, #tpu.memory_space<vmem>>, vector<1x16x32xf32>
    %c0_14 = arith.constant 0 : index
    %c2_15 = arith.constant 2 : index
    %c0_16 = arith.constant 0 : index
    %12 = vector.load %arg4[%c0_14, %c2_15, %c0_16] : memref<1x20x32xf32, #tpu.memory_space<vmem>>, vector<1x16x32xf32>
    %c0_17 = arith.constant 0 : index
    %c3 = arith.constant 3 : index
    %c0_18 = arith.constant 0 : index
    %13 = vector.load %arg4[%c0_17, %c3, %c0_18] : memref<1x20x32xf32, #tpu.memory_space<vmem>>, vector<1x16x32xf32>
    %c0_19 = arith.constant 0 : index
    %c4 = arith.constant 4 : index
    %c0_20 = arith.constant 0 : index
    %14 = vector.load %arg4[%c0_19, %c4, %c0_20] : memref<1x20x32xf32, #tpu.memory_space<vmem>>, vector<1x16x32xf32>
    %15 = arith.addf %10, %11 : vector<1x16x32xf32>
    %16 = arith.addf %12, %13 : vector<1x16x32xf32>
    %17 = arith.addf %15, %16 : vector<1x16x32xf32>
    %18 = arith.addf %17, %14 : vector<1x16x32xf32>
    %cst = arith.constant 2.000000e-01 : f32
    %19 = vector.broadcast %cst : f32 to vector<1x16x32xf32>
    %20 = arith.mulf %18, %19 : vector<1x16x32xf32>
    %c0_21 = arith.constant 0 : index
    %c0_22 = arith.constant 0 : index
    %c0_23 = arith.constant 0 : index
    %21 = vector.load %arg3[%c0_21, %c0_22, %c0_23] : memref<1x16x32xf32, #tpu.memory_space<vmem>>, vector<1x16x32xf32>
    tpu.vector_store %arg3[%c0_21, %c0_22, %c0_23], %20 {strides = array<i32>} : memref<1x16x32xf32, #tpu.memory_space<vmem>>, vector<1x16x32xf32>,
    %22 = arith.subf %0, %20 : vector<1x16x32xf32>
    %c0_24 = arith.constant 0 : index
    %c0_25 = arith.constant 0 : index
    %c0_26 = arith.constant 0 : index
    %23 = vector.load %arg2[%c0_24, %c0_25, %c0_26] : memref<1x16x32xf32, #tpu.memory_space<vmem>>, vector<1x16x32xf32>
    tpu.vector_store %arg2[%c0_24, %c0_25, %c0_26], %22 {strides = array<i32>} : memref<1x16x32xf32, #tpu.memory_space<vmem>>, vector<1x16x32xf32>,
    return
  }
  func.func @transform_0(%arg0: i32) -> (i32, i32, i32) {
    %c0_i32 = arith.constant 0 : i32
    %c0_i32_0 = arith.constant 0 : i32
    %c0_i32_1 = arith.constant 0 : i32
    return %arg0, %c0_i32, %c0_i32_0 : i32, i32, i32
  }
  func.func @transform_1(%arg0: i32) -> (i32, i32, i32) {
    %c0_i32 = arith.constant 0 : i32
    %c0_i32_0 = arith.constant 0 : i32
    %c0_i32_1 = arith.constant 0 : i32
    return %arg0, %c0_i32, %c0_i32_0 : i32, i32, i32
  }
  func.func @transform_2(%arg0: i32) -> (i32, i32, i32) {
    %c0_i32 = arith.constant 0 : i32
    %c0_i32_0 = arith.constant 0 : i32
    %c0_i32_1 = arith.constant 0 : i32
    return %arg0, %c0_i32, %c0_i32_0 : i32, i32, i32
  }
}

</mosaic_0001>

<bundles_post_ra>
// kernel: tpu_custom_call.1
= control target key start
LH: loop header
LB: loop body
LE: loop exit
PB: predicated region body
PF: predicated region fallthrough
CT: control target
= control target key end

     0   :  { %8 = vsyncpa [#allocation4], 0  ;;  %s791_s0 = inlined_call_operand.hbm [shape: f32[2,16,32], index: 0, kind: input, shape index: {}]   ;;  %s792_s1 = inlined_call_operand.hbm [shape: f32[2,16,32], index: 1, kind: output, shape index: {0}]   ;;  %s793_s2 = inlined_call_operand.hbm [shape: f32[2,16,32], index: 2, kind: output, shape index: {1}]  }
   0x1   :  { %10 = vsyncpa [#allocation4 + $0x1], 0 }
   0x2   :  { %11 = vsyncpa [#allocation5], 0 }
   0x3   :  { %13 = vsyncpa [#allocation5 + $0x1], 0 }
   0x4   :  { %14 = vsyncpa [#allocation8], 0 }
   0x5   :  { %16 = vsyncpa [#allocation8 + $0x1], 0  ;;  %s577_s9 = smov 0   ;;  %s579_s10 = smov 0  }
   0x6   :  { %s581_s11 = smov 0   ;;  %s583_s12 = smov 0  }
   0x7 LB: > { %s598_s13 = sadd.s32 4294967295, %s553_s12   ;;  %s355_s14 = sadd.s32 4294967294, %s553_s12   ;;  %s553_s12 = sphi %s583_s12, %s808_s12   ;;  %s549_s11 = sphi %s581_s11, %s807_s11   ;;  %s545_s10 = sphi %s579_s10, %s806_s10   ;;  %s541_s9 = sphi %s577_s9, %s805_s9  }
   0x8   : > { %s602_s15 = sadd.s32 1, %s553_s12   ;;  %s29_s16 = sadd.s32 1, %s549_s11 }
   0x9   : > { %s26_s17 = ssub.s32 %s553_s12, %s602_s15  ;;  %p36_p0 = scmp.ne.s32.totalorder %s549_s11, %s545_s10 }
   0xa   : > { %p27_p1 = scmp.eq.s32.totalorder %s26_s17, 0  ;;  %p37_p2 = scmp.eq.s32.totalorder %s553_s12, 0 }
   0xb   : > { %p42_p3 = scmp.ne.s32.totalorder %s545_s10, %s541_s9  ;;  %p43_p4 = scmp.eq.s32.totalorder %s598_s13, 0 }
   0xc   : > { %s614_s18 = scalar_select %p27_p1, %s549_s11, %s29_s16  }
   0xd   : > { %p616_p5 = por %p37_p2, %p36_p0  ;;  %p620_p6 = por %p43_p4, %p42_p3 }
   0xe   : > { %p66_p7 = scmp.eq.s32.totalorder %s598_s13, 1  ;;  %p72_p8 = scmp.eq.s32.totalorder %s355_s14, 1 }
   0xf   : > { %s797_s20 = scalar_select %p620_p6, 1, 0 }
  0x10   : > { %p393_p10 = scmp.lt.s32.totalorder %s553_s12, 2  ;;  %p627_p11 = por %p66_p7, %p36_p0 }
  0x11   : > { %p631_p12 = por %p72_p8, %p42_p3  ;;  %s118_s23 = sand.u32 1, %s549_s11  }
  0x12   : > { %s798_s21 = scalar_select %p627_p11, 1, 0 }
  0x13   : > { %s799_s22 = scalar_select %p631_p12, 1, 0 }
  0x14   : > { %s373_s24 = sshll.u32 %s553_s12, 8  ;;  %s358_s25 = sshll.u32 %s118_s23, 4 }
  0x15   : > { %s640_s28 = scalar_lea.hbm %s791_s0, %s373_s24  ;;  %s122_s29 = scalar_lea.vmem [#allocation3], %s358_s25 }
  0x16   : > { %s129_s30 = sshll.u32 %s122_s29, 4  ;;  %p644_p13 = pnand %p393_p10, %p616_p5  ;;  %s648_s30 = int_to_ptr.vmem [resolvable:$true] %s129_s30 }
  0x17   : > { %s650_s4 = scalar_lea.sflag [#allocation4], %s118_s23  ;;  %s431_s5 = scalar_lea.hbm %s640_s28, 256 }
  0x18   : > { %p432_p0 = scmp.ne.s32.totalorder %s640_s28, %s431_s5  ;;  %p433_p1 = pneg %p644_p13 }
  0x19   : > { %s436_s8 = scalar_lea.hbm %s791_s0, 512  ;;  %p437_p4 = scmp.lt.s32.totalorder %s640_s28, %s791_s0 }
  0x1a   : > { %p434_p2 = pnand %p433_p1, %p432_p0  ;;  %p438_p5 = scmp.lt.s32.totalorder %s436_s8, %s431_s5 }
  0x1c   : > { %p435_p3 = pneg %p434_p2  ;;  %p439_p7 = por %p438_p5, %p437_p4 }
  0x1e   : > { %p440_p8 = pnand %p439_p7, %p435_p3 }
  0x20   : > { %443 = shalt.err (!%p440_p8)
}
  0x21   : > { %s444_s17 = scalar_lea.vmem %s648_s30, 256  ;;  %s555_s19 = smov [#allocation3]  }
  0x22   : > { %p445_p10 = scmp.ne.s32.totalorder %s648_s30, %s444_s17  ;;  %s449_s23 = sshll.u32 %s555_s19, 4  ;;  %s450_s23 = int_to_ptr.vmem [resolvable:$false] %s449_s23 }
  0x23   : > { %s451_s24 = scalar_lea.vmem %s450_s23, 512  ;;  %p452_p2 = scmp.lt.s32.totalorder %s648_s30, %s450_s23 }
  0x24   : > { %p447_p9 = pnand %p445_p10, %p433_p1  ;;  %p453_p12 = scmp.lt.s32.totalorder %s451_s24, %s444_s17 }
  0x26   : > { %p448_p0 = pneg %p447_p9  ;;  %p454_p11 = por %p453_p12, %p452_p2 }
  0x28   : > { %p455_p6 = pnand %p454_p11, %p448_p0 }
  0x2a   : > { %458 = shalt.err (!%p455_p6)
}
  0x2b   : > { %s556_s25 = smov 128   ;;  %s557_s26 = smov 8  }
  0x2c   : > { %385 = dma.hbm_to_vmem [thread:$0]  (!%p644_p13), %s640_s28, 256, %s648_s30, %s650_s4, %s556_s25, %s556_s25, %s557_s26  }
  0x2d   : > { %p361_p9 = scmp.ge.s32.totalorder %s553_s12, 1  ;;  %p137_p1 = scmp.lt.s32.totalorder %s553_s12, 3 }
  0x2f   : > { %p138_p3 = pnand %p361_p9, %p137_p1 }
  0x30   : > { %s674_s27 = sand.u32 (!%p138_p3), 1, %s545_s10   ;;  %p801_p6 = scmp.ne.s32.totalorder (!%p138_p3), %s797_s20, 0 }
  0x31   : > { %141 = sbr.rel (%p138_p3) target bundleno = 116 (0x74), region = 24  ;;  %s677_s29 = sshll.u32 (!%p138_p3), %s674_s27, 4 }
  0x32   : > { %s144_s5 = scalar_lea.sflag (!%p138_p3), [#allocation4], %s674_s27  ;;  %s147_s6 = scalar_lea.vmem (!%p138_p3), [#allocation3], %s677_s29 }
  0x36   : > { %528 = dma.done.wait (%p801_p6), %s144_s5, 256  }
  0x37   : > { %530 = vsyncadd (%p801_p6), %s144_s5, 4294967040  ;;  %v178_v0 = vlaneseq  ;;  %vm175_vm0 = vcmask 261120   ;;  %v685_v4 = vld [vmem:[%s147_s6] sm:$0xff]  ;;  %v687_v5 = vld [vmem:[%s147_s6 + $0x8] sm:$0xff]  ;;  %vm182_vm1 = vcmask 254976   ;;  %s172_s20 = scalar_lea.vmem [#allocation7], %s677_s29 }
  0x38   : > { %176 = vst.msk [vmem:[#allocation2 + $0x2] sm:$0xff] %vm175_vm0, %v685_v4  ;;  %177 = vst.msk [vmem:[#allocation2 + $0xa] sm:$0xff] %vm175_vm0, %v687_v5  ;;  %s250_s28 = sshll.u32 %s172_s20, 4  ;;  %s374_s30 = sshll.u32 %s598_s13, 8  ;;  %s697_s28 = int_to_ptr.vmem [resolvable:$true] %s250_s28 }
  0x39   : > { %v179_v1 = vshrl.u32 %v178_v0, 7  ;;  %s700_s3 = scalar_lea.vmem [#allocation6], %s677_s29  ;;  %s706_s14 = scalar_lea.hbm %s793_s2, %s374_s30 }
  0x3a   : > { %s234_s4 = sshll.u32 %s700_s3, 4  ;;  %s717_s17 = scalar_lea.hbm %s792_s1, %s374_s30  ;;  %s708_s4 = int_to_ptr.vmem [resolvable:$true] %s234_s4 }
  0x3b   : > { %v180_v2 = vsub.s32 0, %v179_v1  ;;  %v186_v3 = vsub.s32 7, %v179_v1  ;;  %s221_s19 = scalar_lea.sflag [#allocation8], %s674_s27  ;;  %s459_s23 = scalar_lea.vmem %s697_s28, 256 }
  0x3c   : > { %p460_p11 = scmp.ne.s32.totalorder %s697_s28, %s459_s23  ;;  %p802_p12 = scmp.ne.s32.totalorder %s798_s21, 0 }
  0x3d   : > { %v181_v6 = vrot.slane %v685_v4, %v180_v2  ;;  %v187_v7 = vrot.slane %v687_v5, %v186_v3  ;;  %s558_s24 = smov [#allocation7]  }
  0x3e   : > { %p461_p13 = pnand %p460_p11, %p802_p12  ;;  %s463_s25 = sshll.u32 %s558_s24, 4  ;;  %s464_s25 = int_to_ptr.vmem [resolvable:$false] %s463_s25 }
  0x3f   : > { %183 = vst.msk [vmem:[#allocation2] sm:$0x3] %vm182_vm1, %v181_v6  ;;  %188 = vst.msk [vmem:[#allocation2 + $0x12] sm:$0x3] %vm182_vm1, %v187_v7  ;;  %v193_v8 = vld [vmem:[#allocation2 + $0x2] sm:$0xff]  ;;  %v194_v13 = vld [vmem:[#allocation2 + $0xa] sm:$0xff]  ;;  %p466_p5 = scmp.lt.s32.totalorder %s697_s28, %s464_s25 }
  0x40   : > { %v195_v9 = vld [vmem:[#allocation2 + $0x3] sm:$0xff]  ;;  %p462_p4 = pneg %p461_p13  ;;  %s465_s26 = scalar_lea.vmem %s464_s25, 512 }
  0x41   : > { %v201_v10 = vadd.f32 %v195_v9, %v193_v8  ;;  %v190_v11 = vld [vmem:[#allocation2 + $0x8] sm:$0xff]  ;;  %p467_p7 = scmp.lt.s32.totalorder %s465_s26, %s459_s23 }
  0x42   : > { %v192_v12 = vld [vmem:[#allocation2 + $0x9] sm:$0xff] }
  0x43   : > { %v200_v17 = vadd.f32 %v192_v12, %v190_v11  ;;  %v197_v22 = vld [vmem:[#allocation2 + $0x4] sm:$0xff]  ;;  %p468_p8 = por %p467_p7, %p466_p5 }
  0x45   : > { %p469_p10 = pnand %p468_p8, %p462_p4 }
  0x46   : > { %v189_v14 = vld [vmem:[#allocation2] sm:$0xff]  ;;  %v196_v16 = vld [vmem:[#allocation2 + $0xb] sm:$0xff] }
  0x47   : > { %v191_v15 = vld [vmem:[#allocation2 + $0x1] sm:$0xff]  ;;  %v202_v19 = vadd.f32 %v196_v16, %v194_v13  ;;  %v198_v23 = vld [vmem:[#allocation2 + $0xc] sm:$0xff] }
  0x48   : > { %v199_v18 = vadd.f32 %v191_v15, %v189_v14 }
  0x49   : > { %v204_v21 = vadd.f32 %v202_v19, %v200_v17 }
  0x4a   : > { %v203_v20 = vadd.f32 %v201_v10, %v199_v18 }
  0x4b   : > { %v206_v25 = vadd.f32 %v204_v21, %v198_v23 }
  0x4c   : > { %v205_v24 = vadd.f32 %v203_v20, %v197_v22 }
  0x4d   : > { %v208_v27 = vmul.f32 0.2, %v206_v25 }
  0x4e   : > { %v207_v26 = vmul.f32 0.2, %v205_v24 }
  0x4f   : > { %210 = vst.msk [vmem:[%s172_s20 + $0x8] sm:$0xff] %vm175_vm0, %v208_v27  ;;  %v212_v29 = vsub.f32 %v687_v5, %v208_v27 }
  0x50   : > { %209 = vst.msk [vmem:[%s172_s20] sm:$0xff] %vm175_vm0, %v207_v26  ;;  %v211_v28 = vsub.f32 %v685_v4, %v207_v26 }
  0x51   : > { %472 = shalt.err (!%p469_p10)
}
  0x52   : > { %s473_s29 = scalar_lea.hbm %s706_s14, 256  ;;  %s477_s20 = scalar_lea.hbm %s793_s2, 512 }
  0x53   : > { %p474_p0 = scmp.ne.s32.totalorder %s706_s14, %s473_s29  ;;  %p478_p1 = scmp.lt.s32.totalorder %s706_s14, %s793_s2 }
  0x54   : > { %p479_p3 = scmp.lt.s32.totalorder %s477_s20, %s473_s29 }
  0x55   : > { %p475_p2 = pnand %p474_p0, %p802_p12 }
  0x56   : > { %p480_p6 = por %p479_p3, %p478_p1 }
  0x57   : > { %p476_p9 = pneg %p475_p2 }
  0x59   : > { %p481_p11 = pnand %p480_p6, %p476_p9 }
  0x5b   : > { %484 = shalt.err (!%p481_p11)
}
  0x5c   : > { %s559_s8 = smov 128   ;;  %s560_s13 = smov 8   ;;  %213 = vst.msk [vmem:[%s700_s3] sm:$0xff] %vm175_vm0, %v211_v28  ;;  %214 = vst.msk [vmem:[%s700_s3 + $0x8] sm:$0xff] %vm175_vm0, %v212_v29 }
  0x5d   : > { %379 = dma.vmem_to_hbm [thread:$0]  (%p802_p12), %s697_s28, 256, %s706_s14, %s221_s19, %s559_s8, %s559_s8, %s560_s13  }
  0x5e   : > { %s216_s16 = scalar_lea.sflag [#allocation5], %s674_s27  ;;  %s485_s23 = scalar_lea.vmem %s708_s4, 256 }
  0x5f   : > { %p486_p13 = scmp.ne.s32.totalorder %s708_s4, %s485_s23  ;;  %s561_s24 = smov [#allocation6]  }
  0x60   : > { %s489_s25 = sshll.u32 %s561_s24, 4  ;;  %s490_s25 = int_to_ptr.vmem [resolvable:$false] %s489_s25 }
  0x61   : > { %p487_p4 = pnand %p486_p13, %p802_p12  ;;  %s491_s26 = scalar_lea.vmem %s490_s25, 512 }
  0x62   : > { %p492_p7 = scmp.lt.s32.totalorder %s708_s4, %s490_s25  ;;  %p493_p8 = scmp.lt.s32.totalorder %s491_s26, %s485_s23 }
  0x63   : > { %p488_p5 = pneg %p487_p4 }
  0x64   : > { %p494_p10 = por %p493_p8, %p492_p7 }
  0x66   : > { %p495_p0 = pnand %p494_p10, %p488_p5 }
  0x68   : > { %498 = shalt.err (!%p495_p0)
}
  0x69   : > { %s499_s28 = scalar_lea.hbm %s717_s17, 256  ;;  %s503_s14 = scalar_lea.hbm %s792_s1, 512 }
  0x6a   : > { %p500_p2 = scmp.ne.s32.totalorder %s717_s17, %s499_s28  ;;  %p504_p3 = scmp.lt.s32.totalorder %s717_s17, %s792_s1 }
  0x6b   : > { %p505_p6 = scmp.lt.s32.totalorder %s503_s14, %s499_s28 }
  0x6c   : > { %p501_p9 = pnand %p500_p2, %p802_p12 }
  0x6d   : > { %p506_p11 = por %p505_p6, %p504_p3 }
  0x6e   : > { %p502_p1 = pneg %p501_p9 }
  0x70   : > { %p507_p13 = pnand %p506_p11, %p502_p1 }
  0x72   : > { %510 = shalt.err (!%p507_p13)
}
  0x73   : > { %378 = dma.vmem_to_hbm [thread:$0]  (%p802_p12), %s708_s4, 256, %s717_s17, %s216_s16, %s559_s8, %s559_s8, %s560_s13  }
  0x74 PF: > { %s265_s5 = sand.u32 1, %s541_s9   ;;  %p803_p4 = scmp.ne.s32.totalorder %s799_s22, 0 }
  0x75   : > { %p804_p5 = scmp.ge.s32.totalorder %s553_s12, 2  ;;  %s266_s6 = scalar_lea.sflag [#allocation5], %s265_s5 }
  0x77   : > { %p387_p7 = pnand %p804_p5, %p803_p4 }
  0x79   : > { %p388_p8 = pneg %p387_p7 }
  0x7b   : > { %532 = dma.done.wait (%p388_p8), %s266_s6, 256  }
  0x7c   : > { %534 = vsyncadd (%p388_p8), %s266_s6, 4294967040  ;;  %s275_s20 = scalar_lea.sflag [#allocation8], %s265_s5 }
  0x7d   : > { %536 = dma.done.wait (%p388_p8), %s275_s20, 256  }
  0x7e   : > { %538 = vsyncadd (%p388_p8), %s275_s20, 4294967040  ;;  %p19_p12 = scmp.ge.s32.totalorder %s602_s15, 4   ;;  %s805_s9 = smov %s545_s10 }
  0x7f   : > { %s806_s10 = smov %s549_s11  ;;  %s807_s11 = smov %s614_s18 }
  0x80   : > { %s808_s12 = smov %s602_s15  ;;  %21 = sbr.rel (!%p19_p12) target bundleno = 7 (0x7), region = 86 }
  0x85   :  { %280 = vsyncpa [#allocation4], 1 }
  0x86   :  { %282 = vsyncpa [#allocation4 + $0x1], 1 }
  0x87   :  { %283 = vsyncpa [#allocation5], 1 }
  0x88   :  { %285 = vsyncpa [#allocation5 + $0x1], 1 }
  0x89   :  { %286 = vsyncpa [#allocation8], 1 }
  0x8a   :  { %288 = vsyncpa [#allocation8 + $0x1], 1 }

</bundles_post_ra>
